<compile_context>
chip_gen: v6e
topology: v6e:2x2x1
jax: 0.10.0
libtpu: 0.0.40
codegen_flags: <defaults>
</compile_context>

<pallas_src>
import jax
import jax.numpy as jnp
from jax.experimental import pallas as pl
from jax.experimental.pallas import tpu as pltpu


def _rect_kernel(x_ref, adj_ref, w_ref, b_ref, out_ref, acc_ref):
    # x_ref:   [tk, Fp]   bf16  padded node features (src tile)
    # adj_ref: [tm, tk]   bf16  dense weighted adjacency tile (dst x src)
    # w_ref:   [Fp, Fp]   bf16  fused weight  W_gcn^T @ W_fc^T (zero-padded)
    # b_ref:   [1,  Fp]   f32   fused bias    b_gcn @ W_fc^T + b_fc (zero-padded)
    # out_ref: [tm, Fp]   f32   predictions tile
    # acc_ref: [tm, Fp]   f32   VMEM accumulator for (adj @ x) over the k axis
    k = pl.program_id(1)

    @pl.when(k == 0)
    def _init():
        acc_ref[...] = jnp.zeros_like(acc_ref)

    acc_ref[...] += jnp.dot(
        adj_ref[...], x_ref[...], preferred_element_type=jnp.float32
    )

    # TODO(synk): dropout is identity here (eval mode); a training-mode dropout
    # on h_1 would use pltpu.prng_seed / pltpu.prng_random_bits before the fc matmul.
    @pl.when(k == pl.num_programs(1) - 1)
    def _finalize():
        h1 = acc_ref[...].astype(jnp.bfloat16)
        out_ref[...] = (
            jnp.dot(h1, w_ref[...], preferred_element_type=jnp.float32)
            + b_ref[...]
        )


def _round_up(v, m):
    return ((v + m - 1) // m) * m


def rect_l_forward(x, adj, wg_t, bg, wf_t, bf, *, tm=256, tk=512):
    """x: [N, F_in] f32, adj: [N, N] f32 (dst x src), wg_t: [F_in, H],
    bg: [1, H], wf_t: [H, F_in], bf: [1, F_in].  Returns [N, F_in] f32."""
    N, F_in = x.shape

    # ---- algebraic fusion (exact: dropout is identity in eval mode) ----
    w_comb = jnp.dot(wg_t, wf_t)                    # [F_in, F_in]
    b_comb = jnp.dot(bg, wf_t) + bf                 # [1, F_in]

    # ---- lane-dense feature padding (32 -> 128 lanes) ----
    Fp = _round_up(max(F_in, 128), 128)

    # ---- tile sizes clamped for small graphs, N padded to whole tiles ----
    tm = min(tm, _round_up(N, 8))        # dst-row tile (sublane multiple)
    tk = min(tk, _round_up(N, 128))      # src-col tile (lane multiple)
    Nr = _round_up(N, tm)                # padded dst rows
    Nc = _round_up(N, tk)                # padded src cols

    # ---- bf16 casts + zero padding (padded rows/cols contribute nothing) ----
    x_p = jnp.zeros((Nc, Fp), jnp.bfloat16).at[:N, :F_in].set(
        x.astype(jnp.bfloat16))
    adj_p = jnp.zeros((Nr, Nc), jnp.bfloat16).at[:N, :N].set(
        adj.astype(jnp.bfloat16))
    w_p = jnp.zeros((Fp, Fp), jnp.bfloat16).at[:F_in, :F_in].set(
        w_comb.astype(jnp.bfloat16))
    b_p = jnp.zeros((1, Fp), jnp.float32).at[:, :F_in].set(
        b_comb.astype(jnp.float32))

    grid = (Nr // tm, Nc // tk)

    out_p = pl.pallas_call(
        _rect_kernel,
        out_shape=jax.ShapeDtypeStruct((Nr, Fp), jnp.float32),
        grid_spec=pltpu.PrefetchScalarGridSpec(
            num_scalar_prefetch=0,
            grid=grid,
            in_specs=[
                pl.BlockSpec((tk, Fp), lambda i, k: (k, 0)),   # x (src tile)
                pl.BlockSpec((tm, tk), lambda i, k: (i, k)),   # adj tile
                pl.BlockSpec((Fp, Fp), lambda i, k: (0, 0)),   # fused weight
                pl.BlockSpec((1, Fp), lambda i, k: (0, 0)),    # fused bias
            ],
            out_specs=pl.BlockSpec((tm, Fp), lambda i, k: (i, 0)),
            scratch_shapes=[pltpu.VMEM((tm, Fp), jnp.float32)],
        ),
        compiler_params=pltpu.CompilerParams(
            dimension_semantics=("parallel", "arbitrary"),
        ),
    )(x_p, adj_p, w_p, b_p)

    return out_p[:N, :F_in]


def _xavier_uniform(key, shape):
    # shape = (fan_out, fan_in), matching torch Linear weight layout
    fan_out, fan_in = shape
    bound = (6.0 / (fan_in + fan_out)) ** 0.5
    return jax.random.uniform(key, shape, jnp.float32, -bound, bound)


if __name__ == "__main__":
    in_feats, n_hidden, dropout = 32, 8, 0.5
    N, E = 16, 48

    key = jax.random.PRNGKey(0)
    k_x, k_src, k_dst, k_w, k_wg, k_wf, k_bf = jax.random.split(key, 7)

    # inputs: node features, edge_index [2, E], edge_attr [E]
    x = jax.random.normal(k_x, (N, in_feats), jnp.float32)
    src = jax.random.randint(k_src, (E,), 0, N)
    dst = jax.random.randint(k_dst, (E,), 0, N)
    edge_index = jnp.stack([src, dst], axis=0)
    edge_attr = jax.random.uniform(k_w, (E,), jnp.float32, 0.1, 1.0)

    # glue: densify sparse graph -> A[dst, src] accumulates edge weights
    adj = jnp.zeros((N, N), jnp.float32).at[edge_index[1], edge_index[0]].add(edge_attr)

    # deterministic parameter init (shapes from module __init__)
    w_gcn = _xavier_uniform(k_wg, (n_hidden, in_feats))        # glorot, like PyG GCNConv
    b_gcn = jnp.zeros((1, n_hidden), jnp.float32)              # PyG GCNConv bias init: zeros
    w_fc = _xavier_uniform(k_wf, (in_feats, n_hidden))         # torch.nn.init.xavier_uniform_
    fc_bound = 1.0 / (n_hidden ** 0.5)
    b_fc = jax.random.uniform(k_bf, (1, in_feats), jnp.float32, -fc_bound, fc_bound)

    preds = rect_l_forward(x, adj, w_gcn.T, b_gcn, w_fc.T, b_fc)
    jax.block_until_ready(preds)

    # reference check in plain f32 JAX (kernel runs bf16 inputs / f32 accum)
    ref = (adj @ (x @ w_gcn.T) + b_gcn) @ w_fc.T + b_fc
    assert preds.shape == (N, in_feats)
    assert jnp.allclose(preds, ref, atol=5e-2, rtol=5e-2), (
        float(jnp.max(jnp.abs(preds - ref))))

    print("KERNEL_OK")
</pallas_src>

<mosaic_0001>
module attributes {stable_mosaic.version = 11 : i64} {
  func.func @_rect_kernel(%arg0: i32, %arg1: i32, %arg2: memref<128x128xbf16, #tpu.memory_space<vmem>>, %arg3: memref<16x128xbf16, #tpu.memory_space<vmem>>, %arg4: memref<128x128xbf16, #tpu.memory_space<vmem>>, %arg5: memref<1x128xf32, #tpu.memory_space<vmem>>, %arg6: memref<16x128xf32, #tpu.memory_space<vmem>>, %arg7: memref<16x128xf32, #tpu.memory_space<vmem>>) attributes {dimension_semantics = [#tpu.dimension_semantics<parallel>, #tpu.dimension_semantics<arbitrary>], iteration_bounds = array<i64: 1, 1>, scalar_prefetch = 0 : i64, scratch_operands = 1 : i64, tpu.core_type = #tpu.core_type<tc>, window_params = [{transform_indices = @transform_0, window_bounds = array<i64: 128, 128>}, {transform_indices = @transform_1, window_bounds = array<i64: 16, 128>}, {pipeline_mode = #tpu.pipeline_mode<synchronous>, transform_indices = @transform_2, window_bounds = array<i64: 128, 128>}, {pipeline_mode = #tpu.pipeline_mode<synchronous>, transform_indices = @transform_3, window_bounds = array<i64: 1, 128>}, {transform_indices = @transform_4, window_bounds = array<i64: 16, 128>}]} {
    %c0_i32 = arith.constant 0 : i32
    %0 = arith.cmpi eq, %arg1, %c0_i32 : i32
    %1 = arith.extui %0 : i1 to i32
    %c0_i32_0 = arith.constant 0 : i32
    %2 = arith.cmpi ne, %1, %c0_i32_0 : i32
    scf.if %2 {
      %cst_10 = arith.constant 0.000000e+00 : f32
      %12 = vector.broadcast %cst_10 : f32 to vector<16x128xf32>
      %c0_11 = arith.constant 0 : index
      %c0_12 = arith.constant 0 : index
      %13 = vector.load %arg7[%c0_11, %c0_12] : memref<16x128xf32, #tpu.memory_space<vmem>>, vector<16x128xf32>
      tpu.vector_store %arg7[%c0_11, %c0_12], %12 {strides = array<i32>} : memref<16x128xf32, #tpu.memory_space<vmem>>, vector<16x128xf32>,
    } else {
    }
    %c0 = arith.constant 0 : index
    %c0_1 = arith.constant 0 : index
    %3 = vector.load %arg7[%c0, %c0_1] : memref<16x128xf32, #tpu.memory_space<vmem>>, vector<16x128xf32>
    %c0_2 = arith.constant 0 : index
    %c0_3 = arith.constant 0 : index
    %4 = vector.load %arg3[%c0_2, %c0_3] : memref<16x128xbf16, #tpu.memory_space<vmem>>, vector<16x128xbf16>
    %c0_4 = arith.constant 0 : index
    %c0_5 = arith.constant 0 : index
    %5 = vector.load %arg2[%c0_4, %c0_5] : memref<128x128xbf16, #tpu.memory_space<vmem>>, vector<128x128xbf16>
    %cst = arith.constant dense<0.000000e+00> : vector<16x128xf32>
    %6 = tpu.matmul %4, %5, %cst {dimension_numbers = #tpu.dot_dimension_numbers<[1], [0], [0], [1], [0, 0, 1, 1], [], []>} : vector<16x128xbf16>, vector<128x128xbf16>, vector<16x128xf32> -> vector<16x128xf32>
    %7 = arith.addf %3, %6 : vector<16x128xf32>
    %c0_6 = arith.constant 0 : index
    %c0_7 = arith.constant 0 : index
    %8 = vector.load %arg7[%c0_6, %c0_7] : memref<16x128xf32, #tpu.memory_space<vmem>>, vector<16x128xf32>
    tpu.vector_store %arg7[%c0_6, %c0_7], %7 {strides = array<i32>} : memref<16x128xf32, #tpu.memory_space<vmem>>, vector<16x128xf32>,
    %c0_i32_8 = arith.constant 0 : i32
    %9 = arith.cmpi eq, %arg1, %c0_i32_8 : i32
    %10 = arith.extui %9 : i1 to i32
    %c0_i32_9 = arith.constant 0 : i32
    %11 = arith.cmpi ne, %10, %c0_i32_9 : i32
    scf.if %11 {
      %c0_10 = arith.constant 0 : index
      %c0_11 = arith.constant 0 : index
      %12 = vector.load %arg7[%c0_10, %c0_11] : memref<16x128xf32, #tpu.memory_space<vmem>>, vector<16x128xf32>
      %13 = arith.truncf %12 : vector<16x128xf32> to vector<16x128xbf16>
      %c0_12 = arith.constant 0 : index
      %c0_13 = arith.constant 0 : index
      %14 = vector.load %arg4[%c0_12, %c0_13] : memref<128x128xbf16, #tpu.memory_space<vmem>>, vector<128x128xbf16>
      %cst_14 = arith.constant dense<0.000000e+00> : vector<16x128xf32>
      %15 = tpu.matmul %13, %14, %cst_14 {dimension_numbers = #tpu.dot_dimension_numbers<[1], [0], [0], [1], [0, 0, 1, 1], [], []>} : vector<16x128xbf16>, vector<128x128xbf16>, vector<16x128xf32> -> vector<16x128xf32>
      %c0_15 = arith.constant 0 : index
      %c0_16 = arith.constant 0 : index
      %16 = vector.load %arg5[%c0_15, %c0_16] : memref<1x128xf32, #tpu.memory_space<vmem>>, vector<1x128xf32>
      %17 = vector.broadcast %16 : vector<1x128xf32> to vector<16x128xf32>
      %18 = arith.addf %15, %17 : vector<16x128xf32>
      %c0_17 = arith.constant 0 : index
      %c0_18 = arith.constant 0 : index
      %19 = vector.load %arg6[%c0_17, %c0_18] : memref<16x128xf32, #tpu.memory_space<vmem>>, vector<16x128xf32>
      tpu.vector_store %arg6[%c0_17, %c0_18], %18 {strides = array<i32>} : memref<16x128xf32, #tpu.memory_space<vmem>>, vector<16x128xf32>,
    } else {
    }
    return
  }
  func.func @transform_0(%arg0: i32, %arg1: i32) -> (i32, i32) {
    %c0_i32 = arith.constant 0 : i32
    %c0_i32_0 = arith.constant 0 : i32
    return %arg1, %c0_i32 : i32, i32
  }
  func.func @transform_1(%arg0: i32, %arg1: i32) -> (i32, i32) {
    %c0_i32 = arith.constant 0 : i32
    return %arg0, %arg1 : i32, i32
  }
  func.func @transform_2(%arg0: i32, %arg1: i32) -> (i32, i32) {
    %c0_i32 = arith.constant 0 : i32
    %c0_i32_0 = arith.constant 0 : i32
    %c0_i32_1 = arith.constant 0 : i32
    return %c0_i32, %c0_i32_0 : i32, i32
  }
  func.func @transform_3(%arg0: i32, %arg1: i32) -> (i32, i32) {
    %c0_i32 = arith.constant 0 : i32
    %c0_i32_0 = arith.constant 0 : i32
    %c0_i32_1 = arith.constant 0 : i32
    return %c0_i32, %c0_i32_0 : i32, i32
  }
  func.func @transform_4(%arg0: i32, %arg1: i32) -> (i32, i32) {
    %c0_i32 = arith.constant 0 : i32
    %c0_i32_0 = arith.constant 0 : i32
    return %arg0, %c0_i32 : i32, i32
  }
}

</mosaic_0001>

<bundles_post_ra>
// kernel: tpu_custom_call.1
= control target key start
LH: loop header
LB: loop body
LE: loop exit
PB: predicated region body
PF: predicated region fallthrough
CT: control target
= control target key end

     0   :  { %9 = vsyncpa [#allocation4], 0  ;;  %s562_s0 = inlined_call_operand.hbm [shape: bf16[128,128], index: 0, kind: input, shape index: {}]   ;;  %s563_s1 = inlined_call_operand.hbm [shape: bf16[16,128], index: 1, kind: input, shape index: {}]   ;;  %s564_s2 = inlined_call_operand.hbm [shape: bf16[128,128], index: 2, kind: input, shape index: {}]   ;;  %s565_s3 = inlined_call_operand.vmem [shape: f32[1,128], index: 3, kind: input, shape index: {}]   ;;  %s566_s4 = inlined_call_operand.hbm [shape: f32[16,128], index: 4, kind: output, shape index: {}]  }
   0x1   :  { %10 = vsyncpa [#allocation7], 0 }
   0x2   :  { %11 = vsyncpa [#allocation5], 0  ;;  %s512_s15 = smov [#allocation6]   ;;  %s513_s17 = smov [#allocation3]  }
   0x3   :  { %s29_s16 = sshll.u32 %s512_s15, 4  ;;  %s17_s18 = sshll.u32 %s513_s17, 4  ;;  %s30_s16 = int_to_ptr.vmem [resolvable:$true] %s29_s16  ;;  %s18_s18 = int_to_ptr.vmem [resolvable:$true] %s17_s18 }
   0x4   :  { %s434_s19 = scalar_lea.vmem %s30_s16, 128  ;;  %p439_p1 = scmp.lt.s32.totalorder %s30_s16, %s30_s16 }
   0x5   :  { %p435_p0 = scmp.ne.s32.totalorder %s30_s16, %s434_s19  ;;  %p440_p2 = scmp.lt.s32.totalorder %s434_s19, %s434_s19 }
   0x7   :  { %p441_p3 = por %p440_p2, %p439_p1 }
   0x9   :  { %p442_p4 = pnand %p441_p3, %p435_p0 }
   0xb   :  { %445 = shalt.err (!%p442_p4)
}
   0xc   :  { %s514_s20 = smov 64   ;;  %s515_s21 = smov 4  }
   0xd   :  { %35 = dma.hbm_to_vmem [thread:$0]  %s563_s1, 128, %s30_s16, [#allocation7], %s514_s20, %s514_s20, %s515_s21  }
   0xe   :  { %s454_s24 = scalar_lea.vmem %s18_s18, 1024  ;;  %p459_p6 = scmp.lt.s32.totalorder %s18_s18, %s18_s18 }
   0xf   :  { %p455_p5 = scmp.ne.s32.totalorder %s18_s18, %s454_s24  ;;  %p460_p7 = scmp.lt.s32.totalorder %s454_s24, %s454_s24 }
  0x11   :  { %p461_p8 = por %p460_p7, %p459_p6 }
  0x13   :  { %p462_p9 = pnand %p461_p8, %p455_p5 }
  0x15   :  { %465 = shalt.err (!%p462_p9)
}
  0x16   :  { %23 = dma.hbm_to_vmem [thread:$0]  %s562_s0, 1024, %s18_s18, [#allocation4], %s514_s20, %s514_s20, %s515_s21  }
  0x17   :  { %s516_s27 = smov [#allocation8]  }
  0x18   :  { %s41_s28 = sshll.u32 %s516_s27, 4  ;;  %s42_s28 = int_to_ptr.vmem [resolvable:$true] %s41_s28 }
  0x19   :  { %s474_s29 = scalar_lea.vmem %s42_s28, 1024  ;;  %p479_p11 = scmp.lt.s32.totalorder %s42_s28, %s42_s28 }
  0x1a   :  { %p475_p10 = scmp.ne.s32.totalorder %s42_s28, %s474_s29  ;;  %p480_p12 = scmp.lt.s32.totalorder %s474_s29, %s474_s29 }
  0x1c   :  { %p481_p13 = por %p480_p12, %p479_p11 }
  0x1e   :  { %p482_p0 = pnand %p481_p13, %p475_p10 }
  0x20   :  { %485 = shalt.err (!%p482_p0)
}
  0x21   :  { %47 = dma.hbm_to_vmem [thread:$0]  %s564_s2, 1024, %s42_s28, [#allocation7], %s514_s20, %s514_s20, %s515_s21  }
  0x22   :  { %506 = dma.done.wait [#allocation4], 1024  }
  0x23   :  { %507 = vsyncadd [#allocation4], 4294966272 }
  0x24   :  { %508 = dma.done.wait [#allocation7], 1152  }
  0x25   :  { %509 = vsyncadd [#allocation7], 4294966144  ;;  %v517_v0 = vmov 0.0   ;;  %vm518_vm0 = vmmov 0   ;;  %v409_v1 = vld [vmem:[#allocation3 + $0x38] sm:$0xff]   ;;  %v410_v2 = vld [vmem:[#allocation3 + $0x30] sm:$0xff]  }
  0x26   :  { %359 = vmatprep.subr.bf16.mxu0 %v517_v0  ;;  %375 = vmatprep.mubr.msk.bf16.mxu0 %vm518_vm0, %v517_v0  ;;  %v411_v3 = vld [vmem:[#allocation3 + $0x28] sm:$0xff]   ;;  %v418_v4 = vld [vmem:[#allocation8 + $0x38] sm:$0xff]   ;;  %v419_v6 = vld [vmem:[#allocation8 + $0x30] sm:$0xff]   ;;  %s519_s5 = smov [#allocation9]  }
  0x27   :  { %379 = vmatprep.subr.bf16.mxu1 %v517_v0  ;;  %395 = vmatprep.mubr.msk.bf16.mxu1 %vm518_vm0, %v517_v0  ;;  %v412_v5 = vld [vmem:[#allocation3 + $0x20] sm:$0xff]   ;;  %v413_v7 = vld [vmem:[#allocation3 + $0x18] sm:$0xff]   ;;  %v420_v8 = vld [vmem:[#allocation8 + $0x28] sm:$0xff]   ;;  %s310_s6 = sshll.u32 %s519_s5, 4  ;;  %s311_s6 = int_to_ptr.vmem [resolvable:$true] %s310_s6 }
  0x28   :  { %360 = vmatpush3.bf16.msra.mxu0 %v409_v1  ;;  %380 = vmatpush3.bf16.msra.mxu1 %v418_v4  ;;  %v414_v9 = vld [vmem:[#allocation3 + $0x10] sm:$0xff]   ;;  %v421_v10 = vld [vmem:[#allocation8 + $0x20] sm:$0xff]   ;;  %v422_v12 = vld [vmem:[#allocation8 + $0x18] sm:$0xff]   ;;  %s486_s7 = scalar_lea.vmem %s311_s6, 256  ;;  %p491_p2 = scmp.lt.s32.totalorder %s311_s6, %s311_s6 }
  0x29   :  { %361 = vmatprep.subr.bf16.mxu0 %v517_v0  ;;  %381 = vmatprep.subr.bf16.mxu1 %v517_v0  ;;  %v415_v11 = vld [vmem:[#allocation3 + $0x8] sm:$0xff]   ;;  %v416_v13 = vld [vmem:[#allocation3] sm:$0xff]   ;;  %v423_v14 = vld [vmem:[#allocation8 + $0x10] sm:$0xff]   ;;  %p487_p1 = scmp.ne.s32.totalorder %s311_s6, %s486_s7  ;;  %p492_p3 = scmp.lt.s32.totalorder %s486_s7, %s486_s7 }
  0x2a   :  { %v417_v15 = vld [vmem:[#allocation6] sm:$0xff]   ;;  %v424_v16 = vld [vmem:[#allocation8 + $0x8] sm:$0xff]   ;;  %v425_v17 = vld [vmem:[#allocation8] sm:$0xff]  }
  0x2b   :  { %v332_v23 = vld [vmem:[%s565_s3] ss:$0 sm:$0xff]  ;;  %p493_p4 = por %p492_p3, %p491_p2 }
  0x2c   :  { %362 = vmatpush3.bf16.msra.mxu0 %v410_v2  ;;  %382 = vmatpush3.bf16.msra.mxu1 %v419_v6 }
  0x2d   :  { %363 = vmatprep.subr.bf16.mxu0 %v517_v0  ;;  %383 = vmatprep.subr.bf16.mxu1 %v517_v0  ;;  %p494_p5 = pnand %p493_p4, %p487_p1 }
  0x30   :  { %364 = vmatpush3.bf16.msra.mxu0 %v411_v3  ;;  %384 = vmatpush3.bf16.msra.mxu1 %v420_v8 }
  0x31   :  { %365 = vmatprep.subr.bf16.mxu0 %v517_v0  ;;  %385 = vmatprep.subr.bf16.mxu1 %v517_v0 }
  0x34   :  { %366 = vmatpush3.bf16.msra.mxu0 %v412_v5  ;;  %386 = vmatpush3.bf16.msra.mxu1 %v421_v10 }
  0x35   :  { %367 = vmatprep.subr.bf16.mxu0 %v517_v0  ;;  %387 = vmatprep.subr.bf16.mxu1 %v517_v0 }
  0x38   :  { %368 = vmatpush3.bf16.msra.mxu0 %v413_v7  ;;  %388 = vmatpush3.bf16.msra.mxu1 %v422_v12 }
  0x39   :  { %369 = vmatprep.subr.bf16.mxu0 %v517_v0  ;;  %389 = vmatprep.subr.bf16.mxu1 %v517_v0 }
  0x3c   :  { %370 = vmatpush3.bf16.msra.mxu0 %v414_v9  ;;  %390 = vmatpush3.bf16.msra.mxu1 %v423_v14 }
  0x3d   :  { %371 = vmatprep.subr.bf16.mxu0 %v517_v0  ;;  %391 = vmatprep.subr.bf16.mxu1 %v517_v0 }
  0x40   :  { %372 = vmatpush3.bf16.msra.mxu0 %v415_v11  ;;  %392 = vmatpush3.bf16.msra.mxu1 %v424_v16 }
  0x41   :  { %373 = vmatprep.subr.bf16.mxu0 %v517_v0  ;;  %393 = vmatprep.subr.bf16.mxu1 %v517_v0 }
  0x44   :  { %374 = vmatpush3.bf16.msra.mxu0 %v416_v13  ;;  %394 = vmatpush3.bf16.msra.mxu1 %v425_v17 }
  0x47   :  { %376 = vmatmul.mubr.bf16.vlgmr.msra.gmra.mxu0 %v417_v15 }
 0x107   :  { %v174_v18 = vpop.f32.mrf.mxu0 }
 0x109   :  { %v377_v19 = vpop.f32.mrf.mxu0 }
 0x10b   :  { %v177_v20 = vpop.f32.mrf.mxu0 }
 0x10c   :  { %v190_v21 = vpack.c.bf16 %v177_v20, %v174_v18 }
 0x10d   :  { %v378_v22 = vpop.f32.mrf.mxu0 }
 0x10e   :  { %396 = vmatmul.mubr.bf16.vlgmr.msra.gmra.mxu1 %v190_v21 }
 0x1ce   :  { %v296_v24 = vpop.f32.mrf.mxu1 }
 0x1cf   :  { %v297_v25 = vadd.f32 %v332_v23, %v296_v24 }
 0x1d0   :  { %v397_v26 = vpop.f32.mrf.mxu1 }
 0x1d1   :  { %303 = vst [vmem:[#allocation9] sm:$0xff] %v297_v25 }
 0x1d2   :  { %v299_v27 = vpop.f32.mrf.mxu1 }
 0x1d3   :  { %v300_v28 = vadd.f32 %v332_v23, %v299_v27 }
 0x1d4   :  { %v398_v29 = vpop.f32.mrf.mxu1 }
 0x1d5   :  { %304 = vst [vmem:[#allocation9 + $0x8] sm:$0xff] %v300_v28 }
 0x1d6   :  { %497 = shalt.err (!%p494_p5)
}
 0x1d7   :  { %s520_s8 = smov 128   ;;  %s521_s3 = smov 8  }
 0x1d8   :  { %316 = dma.vmem_to_hbm [thread:$0]  %s311_s6, 256, %s566_s4, [#allocation5], %s520_s8, %s520_s8, %s521_s3  }
 0x1d9   :  { %510 = dma.done.wait [#allocation5], 256  }
 0x1da   :  { %511 = vsyncadd [#allocation5], 4294967040 }
 0x1db   :  { %320 = vsyncpa [#allocation4], 1 }
 0x1dc   :  { %321 = vsyncpa [#allocation7], 1 }
 0x1dd   :  { %322 = vsyncpa [#allocation5], 1 }

</bundles_post_ra>
